<compile_context>
chip_gen: v7x
topology: tpu7x:2x2x1
jax: 0.10.0
libtpu: 0.0.40
codegen_flags: <defaults>
</compile_context>

<pallas_src>
import jax
import jax.numpy as jnp
from jax.experimental import pallas as pl
from jax.experimental.pallas import tpu as pltpu


# ----------------------------- kernels ------------------------------------- #

def _scale_bias_kernel(x_ref, w_ref, b_ref, o_ref):
    # x_ref: (tile_r, tile_c); w_ref / b_ref: (tile_r, 1) per-row scale & bias.
    o_ref[...] = x_ref[...] * w_ref[...] + b_ref[...]


def _scale_kernel(x_ref, w_ref, o_ref):
    o_ref[...] = x_ref[...] * w_ref[...]


# ----------------------------- wrapper -------------------------------------- #

_VMEM_WORKING_SET_BUDGET = 40 * 1024 * 1024   # 2x double-buffered (in + out) blocks
_VMEM_LIMIT_BYTES = 48 * 1024 * 1024          # > every scoped default, < v7x 64 MiB


def _round_up(x, m):
    return ((x + m - 1) // m) * m


def _choose_tiling(NC, HW, dtype_bytes):
    """Pick (tile_r, tile_c). Prefers contiguous full-row blocks (tile_c == HW)."""
    # Live VMEM ~= 2 (double buffer) * 2 (in + out) * block_bytes.
    max_rows_full_hw = _VMEM_WORKING_SET_BUDGET // (4 * HW * dtype_bytes)

    if max_rows_full_hw >= 8:
        # ---- preferred path: one contiguous HBM region per block, 1-D grid ----
        tile_c = HW
        max_tile_r = (max_rows_full_hw // 8) * 8
        if NC <= max_tile_r:
            if NC >= 16:
                # Split into 2 row bands so v7x's two TensorCores both get work.
                tile_r = _round_up(pl.cdiv(NC, 2), 8)
            else:
                tile_r = NC                      # full extent (legal even if % 8 != 0)
        else:
            n_tiles = pl.cdiv(NC, max_tile_r)
            if n_tiles % 2 == 1:
                n_tiles += 1                     # even tile count for megacore balance
            tile_r = min(max_tile_r, _round_up(pl.cdiv(NC, n_tiles), 8))
        return tile_r, tile_c

    # ---- fallback: HW too large for full-row blocks -> column tiling ----
    tile_r = NC if NC <= 256 else 256
    tile_c = max(128, (_VMEM_WORKING_SET_BUDGET // (4 * tile_r * dtype_bytes)) // 128 * 128)
    if HW % 128 == 0:
        tile_c = min(tile_c, HW)
    return tile_r, tile_c


def scale_layer(x, weight, bias=None, *, donate_x=False):
    """Equivalent of ScaleLayer.forward.

    x:      (N, C, H, W)  NCHW activations
    weight: (C,)          per-channel scale
    bias:   (C,) or None  per-channel bias
    donate_x: alias the output onto x's buffer (only if the caller donates x).
    """
    N, C, H, W = x.shape
    NC, HW = N * C, H * W
    dtype_bytes = jnp.dtype(x.dtype).itemsize

    # Contiguous collapse -> free (no data movement). Row r <-> channel r % C.
    x2d = x.reshape(NC, HW)
    w_rows = jnp.broadcast_to(weight.astype(x.dtype)[None, :], (N, C)).reshape(NC, 1)

    tile_r, tile_c = _choose_tiling(NC, HW, dtype_bytes)

    if tile_c == HW:
        # 1-D grid over row bands; each block is one contiguous HBM region.
        grid = (pl.cdiv(NC, tile_r),)
        x_spec = pl.BlockSpec((tile_r, HW), lambda i: (i, 0))
        row_spec = pl.BlockSpec((tile_r, 1), lambda i: (i, 0))
        out_spec = pl.BlockSpec((tile_r, HW), lambda i: (i, 0))
        dim_sems = ("parallel",)
    else:
        grid = (pl.cdiv(NC, tile_r), pl.cdiv(HW, tile_c))
        x_spec = pl.BlockSpec((tile_r, tile_c), lambda i, j: (i, j))
        row_spec = pl.BlockSpec((tile_r, 1), lambda i, j: (i, 0))
        out_spec = pl.BlockSpec((tile_r, tile_c), lambda i, j: (i, j))
        dim_sems = ("parallel", "parallel")

    compiler_params = pltpu.CompilerParams(
        dimension_semantics=dim_sems,
        vmem_limit_bytes=_VMEM_LIMIT_BYTES,
    )
    alias = {0: 0} if donate_x else {}

    if bias is None:
        kernel, in_specs, args = _scale_kernel, [x_spec, row_spec], (x2d, w_rows)
    else:
        b_rows = jnp.broadcast_to(bias.astype(x.dtype)[None, :], (N, C)).reshape(NC, 1)
        kernel, in_specs, args = (
            _scale_bias_kernel, [x_spec, row_spec, row_spec], (x2d, w_rows, b_rows))

    out2d = pl.pallas_call(
        kernel,
        out_shape=jax.ShapeDtypeStruct((NC, HW), x.dtype),
        grid_spec=pltpu.PrefetchScalarGridSpec(
            num_scalar_prefetch=0,
            grid=grid,
            in_specs=in_specs,
            out_specs=out_spec,
        ),
        compiler_params=compiler_params,
        input_output_aliases=alias,
    )(*args)

    return out2d.reshape(N, C, H, W)


# ------------------------------ test ---------------------------------------- #

if __name__ == "__main__":
    key = jax.random.PRNGKey(0)
    kx, kw, kb, kx2 = jax.random.split(key, 4)

    # Small shape consistent with the module (num_features = C).
    N, C, H, W = 2, 4, 16, 16
    x = jax.random.normal(kx, (N, C, H, W), dtype=jnp.float32)
    # ScaleLayer init (weight=scale_init, bias=0) would be an identity; use
    # random params so the check is non-trivial. Semantics are identical.
    weight = jax.random.normal(kw, (C,), dtype=jnp.float32)
    bias = jax.random.normal(kb, (C,), dtype=jnp.float32)

    y = jax.block_until_ready(scale_layer(x, weight, bias))
    ref = x * weight[None, :, None, None] + bias[None, :, None, None]
    assert y.shape == ref.shape, y.shape
    assert jnp.allclose(y, ref, atol=1e-6, rtol=1e-6)

    # use_bias=False path
    y_nb = jax.block_until_ready(scale_layer(x, weight, None))
    ref_nb = x * weight[None, :, None, None]
    assert jnp.allclose(y_nb, ref_nb, atol=1e-6, rtol=1e-6)

    # Slightly larger shape to exercise the multi-row-band (2-tile) grid path.
    N2, C2, H2, W2 = 2, 32, 20, 20
    x2 = jax.random.normal(kx2, (N2, C2, H2, W2), dtype=jnp.float32)
    w2 = jax.random.normal(kw, (C2,), dtype=jnp.float32)
    b2 = jax.random.normal(kb, (C2,), dtype=jnp.float32)
    y2 = jax.block_until_ready(scale_layer(x2, w2, b2))
    ref2 = x2 * w2[None, :, None, None] + b2[None, :, None, None]
    assert jnp.allclose(y2, ref2, atol=1e-6, rtol=1e-6)

    print("KERNEL_OK")
</pallas_src>

<mosaic_0001>
module attributes {stable_mosaic.version = 11 : i64} {
  func.func @_scale_bias_kernel(%arg0: i32, %arg1: memref<8x256xf32, #tpu.memory_space<vmem>>, %arg2: memref<8x1xf32, #tpu.memory_space<vmem>>, %arg3: memref<8x1xf32, #tpu.memory_space<vmem>>, %arg4: memref<8x256xf32, #tpu.memory_space<vmem>>) attributes {dimension_semantics = [#tpu.dimension_semantics<parallel>], iteration_bounds = array<i64: 1>, scalar_prefetch = 0 : i64, scratch_operands = 0 : i64, tpu.core_type = #tpu.core_type<tc>, window_params = [{transform_indices = @transform_0, window_bounds = array<i64: 8, 256>}, {transform_indices = @transform_1, window_bounds = array<i64: 8, 1>}, {transform_indices = @transform_2, window_bounds = array<i64: 8, 1>}, {transform_indices = @transform_3, window_bounds = array<i64: 8, 256>}]} {
    %c0 = arith.constant 0 : index
    %c0_0 = arith.constant 0 : index
    %0 = vector.load %arg1[%c0, %c0_0] : memref<8x256xf32, #tpu.memory_space<vmem>>, vector<8x256xf32>
    %c0_1 = arith.constant 0 : index
    %c0_2 = arith.constant 0 : index
    %1 = vector.load %arg2[%c0_1, %c0_2] : memref<8x1xf32, #tpu.memory_space<vmem>>, vector<8x1xf32>
    %2 = vector.broadcast %1 : vector<8x1xf32> to vector<8x256xf32>
    %3 = arith.mulf %0, %2 : vector<8x256xf32>
    %c0_3 = arith.constant 0 : index
    %c0_4 = arith.constant 0 : index
    %4 = vector.load %arg3[%c0_3, %c0_4] : memref<8x1xf32, #tpu.memory_space<vmem>>, vector<8x1xf32>
    %5 = vector.broadcast %4 : vector<8x1xf32> to vector<8x256xf32>
    %6 = arith.addf %3, %5 : vector<8x256xf32>
    %c0_5 = arith.constant 0 : index
    %c0_6 = arith.constant 0 : index
    %7 = vector.load %arg4[%c0_5, %c0_6] : memref<8x256xf32, #tpu.memory_space<vmem>>, vector<8x256xf32>
    tpu.vector_store %arg4[%c0_5, %c0_6], %6 {strides = array<i32>} : memref<8x256xf32, #tpu.memory_space<vmem>>, vector<8x256xf32>,
    return
  }
  func.func @transform_0(%arg0: i32) -> (i32, i32) {
    %c0_i32 = arith.constant 0 : i32
    %c0_i32_0 = arith.constant 0 : i32
    return %arg0, %c0_i32 : i32, i32
  }
  func.func @transform_1(%arg0: i32) -> (i32, i32) {
    %c0_i32 = arith.constant 0 : i32
    %c0_i32_0 = arith.constant 0 : i32
    return %arg0, %c0_i32 : i32, i32
  }
  func.func @transform_2(%arg0: i32) -> (i32, i32) {
    %c0_i32 = arith.constant 0 : i32
    %c0_i32_0 = arith.constant 0 : i32
    return %arg0, %c0_i32 : i32, i32
  }
  func.func @transform_3(%arg0: i32) -> (i32, i32) {
    %c0_i32 = arith.constant 0 : i32
    %c0_i32_0 = arith.constant 0 : i32
    return %arg0, %c0_i32 : i32, i32
  }
}

</mosaic_0001>

<bundles_post_ra>
// kernel: tpu_custom_call.1
= control target key start
LH: loop header
LB: loop body
LE: loop exit
PB: predicated region body
PF: predicated region fallthrough
CT: control target
= control target key end

     0   :  { %s122_s0 = inlined_call_operand.vmem [shape: f32[8,256], index: 0, kind: input, shape index: {}]   ;;  %s123_s1 = inlined_call_operand.vmem [shape: f32[8,1], index: 1, kind: input, shape index: {}]   ;;  %s124_s2 = inlined_call_operand.vmem [shape: f32[8,1], index: 2, kind: input, shape index: {}]   ;;  %s125_s3 = inlined_call_operand.hbm [shape: f32[8,256], index: 3, kind: output, shape index: {}]  }
   0x1   :  { %v17_v0 = vld [vmem:[%s123_s1] sm:$0xff] }
   0x2   :  { %8 = vsyncpa [#allocation3], 0  ;;  %v76_v1 = vmov 0   ;;  %v25_v2 = vld [vmem:[%s124_s2] sm:$0xff]  ;;  %v16_v5 = vld [vmem:[%s122_s0 + $0x8] sm:$0xff]  ;;  %s77_s20 = smov [#allocation2]  }
   0x3   :  { %51 = vset.pattern.permute.xlu0 %v76_v1  ;;  %v15_v4 = vld [vmem:[%s122_s0] sm:$0xff]  ;;  %s41_s1 = sshll.u32 %s77_s20, 4  ;;  %s42_s1 = int_to_ptr.vmem [resolvable:$true] %s41_s1 }
   0x4   :  { %20 = vperm.xlu0 %51, %v17_v0   ;;  %s52_s2 = scalar_lea.vmem %s42_s1, 256  ;;  %p57_p1 = scmp.lt.s32.totalorder %s42_s1, %s42_s1 }
   0x5   :  { %p53_p0 = scmp.ne.s32.totalorder %s42_s1, %s52_s2  ;;  %p58_p2 = scmp.lt.s32.totalorder %s52_s2, %s52_s2 }
   0x7   :  { %p59_p3 = por %p58_p2, %p57_p1 }
   0x8   :  { %28 = vperm.xlu0 %51, %v25_v2  }
   0x9   :  { %p60_p4 = pnand %p59_p3, %p53_p0 }
  0x83   :  { %v21_v3 = vpop.permute.xlu0 %20 }
  0x84   :  { %v23_v6 = vmul.f32 %v21_v3, %v15_v4  ;;  %v24_v7 = vmul.f32 %v21_v3, %v16_v5 }
  0x87   :  { %v29_v8 = vpop.permute.xlu0 %28 }
  0x88   :  { %v31_v9 = vadd.f32 %v29_v8, %v23_v6  ;;  %v32_v10 = vadd.f32 %v29_v8, %v24_v7 }
  0x8a   :  { %33 = vst [vmem:[#allocation2] sm:$0xff] %v31_v9  ;;  %34 = vst [vmem:[#allocation2 + $0x8] sm:$0xff] %v32_v10 }
  0x8b   :  { %63 = shalt.err (!%p60_p4)
}
  0x8c   :  { %s64_s0 = scalar_lea.hbm %s125_s3, 256 }
  0x8d   :  { %p65_p5 = scmp.ne.s32.totalorder %s125_s3, %s64_s0  ;;  %p68_p6 = scmp.lt.u32.totalorder %s64_s0, %s125_s3 }
  0x8f   :  { %p70_p7 = pnand %p68_p6, %p65_p5 }
  0x91   :  { %73 = shalt.err (!%p70_p7)
}
  0x92   :  { %44 = dma.vmem_to_hbm [thread:$0]  %s42_s1, 256, %s125_s3, [#allocation3]  }
  0x93   :  { %74 = dma.done.wait [#allocation3], 256  }
  0x94   :  { %75 = vsyncadd [#allocation3], 4294967040 }
  0x95   :  { %48 = vsyncpa [#allocation3], 1 }

</bundles_post_ra>
